<compile_context>
chip_gen: v5e
topology: v5e:2x2
jax: 0.10.0
libtpu: 0.0.40
codegen_flags: <defaults>
</compile_context>

<pallas_src>
import functools

import numpy as np
import jax
import jax.numpy as jnp
from jax.experimental import pallas as pl
from jax.experimental.pallas import tpu as pltpu


# --------------------------------------------------------------------------------------
# hardware-derived budgets
# --------------------------------------------------------------------------------------
def _vmem_budget_bytes():
    """~75% of physical VMEM (96 MiB on v5e/v6e, 48 MiB on v7x); safe fallback 48 MiB."""
    try:
        cap = int(getattr(pltpu.get_tpu_info(), "vmem_capacity_bytes"))
    except Exception:
        cap = 64 * 1024 * 1024
    return max(32 * 1024 * 1024, (cap * 3) // 4)


def _pick_batch_tile(batch, out_dim, n_g, vmem_budget):
    """Largest multiple-of-8 divisor of `batch` that keeps the CLS working set in budget,
    preferring >= 2 tiles so the (parallel) batch axis can feed both v7x cores."""
    if batch % 8 != 0 or batch <= 8:
        return batch
    # bf16 double-buffered teacher+student + f32 teacher-softmax scratch + f32 temps
    per_row = out_dim * (8 * n_g + 24)
    cap = max(8, int(vmem_budget * 0.6) // per_row)
    cap = min(cap, batch // 2, 512)
    bt = 8
    d = 8
    while d <= cap:
        if batch % d == 0:
            bt = d
        d += 8
    return bt


def _pick_patch_tiling(n_rows, d2, vmem_budget, user_tile):
    """Returns (tile_rows, padded_rows).  tile_rows is a multiple of 8 dividing padded_rows
    exactly (preferring an even tile count for the 2-way core split); padded_rows > n_rows
    only when no aligned divisor of n_rows exists."""
    if user_tile is not None:
        cap = max(1, min(int(user_tile), n_rows))
    else:
        per_row = 20 * d2                      # bf16 dbl-buffered t/s + f32 temporaries
        cap = max(8, int(vmem_budget * 0.6) // per_row)
        cap = min(cap, 1024, n_rows)
    if cap >= n_rows:
        return n_rows, n_rows                  # single full tile
    cap8 = max(8, (cap // 8) * 8)
    best = None
    d = cap8
    while d >= 8:
        if n_rows % d == 0:
            if best is None:
                best = d
            if (n_rows // d) % 2 == 0:         # even tile count -> exact 2-way split
                return d, n_rows
        d -= 8
    if best is not None:
        return best, n_rows
    padded = ((n_rows + cap8 - 1) // cap8) * cap8
    return cap8, padded


# --------------------------------------------------------------------------------------
# [CLS] cross-entropy kernel.
# grid = (n_bt batch tiles [parallel], n_crops student crops [arbitrary]).
# Teacher crops for the batch tile are resident; their softmax is computed once per
# batch tile (v == 0) into `tsm_scr` and reused for every student crop.
# --------------------------------------------------------------------------------------
def _cls_kernel(scal_ref, t_ref, s_ref, c_ref,
                loss1_ref, csum_ref,
                tsm_scr, loss_acc, csum_acc,
                *, n_g, n_crops, inv_student_temp):
    v = pl.program_id(1)

    @pl.when(v == 0)
    def _prep():                                            # once per batch tile
        loss_acc[...] = jnp.zeros_like(loss_acc)
        inv_temp = scal_ref[0]
        c = c_ref[...].astype(jnp.float32)                  # [1, K]
        csum = None
        for q in range(n_g):                                # static unroll
            t = t_ref[q].astype(jnp.float32)                # [bt, K]
            tsum = jnp.sum(t, axis=0, keepdims=True)
            csum = tsum if csum is None else csum + tsum
            tz = (t - c) * inv_temp
            te = jnp.exp(tz - jnp.max(tz, axis=-1, keepdims=True))
            tsm_scr[q] = te / jnp.sum(te, axis=-1, keepdims=True)   # exact softmax
        csum_acc[...] = csum

    # student pieces, computed once per (batch tile, student crop)
    s = s_ref[0].astype(jnp.float32) * inv_student_temp              # [bt, K]
    m = jnp.max(s, axis=-1, keepdims=True)
    lse = m + jnp.log(jnp.sum(jnp.exp(s - m), axis=-1, keepdims=True))   # [bt, 1]

    for q in range(n_g):                                    # static unroll
        @pl.when(v != q)
        def _acc(q=q):
            # sum(-p * log_softmax(s)) == lse(s) - sum(p * s)   (since sum(p) == 1)
            dot = jnp.sum(tsm_scr[q] * s, axis=-1, keepdims=True)    # [bt, 1]
            loss_acc[...] += jnp.sum(lse - dot)

    @pl.when(v == n_crops - 1)
    def _finalize():
        loss1_ref[0] = loss_acc[...]
        csum_ref[0] = csum_acc[...]


# --------------------------------------------------------------------------------------
# Masked patch MIM kernel: rows = flattened (crop, sample, patch) tokens.
# grid = (n_par [parallel], n_inner [arbitrary]); row-tile index = o * n_inner + i.
# --------------------------------------------------------------------------------------
def _patch_kernel(scal_ref, t_ref, s_ref, w_ref, c2_ref,
                  loss2_ref, csum_ref,
                  loss_acc, csum_acc,
                  *, n_inner, n_tiles, guard, inv_student_temp):
    o = pl.program_id(0)
    i = pl.program_id(1)

    @pl.when(i == 0)
    def _init():
        loss_acc[...] = jnp.zeros_like(loss_acc)
        csum_acc[...] = jnp.zeros_like(csum_acc)

    def _compute():
        t = t_ref[...].astype(jnp.float32)                  # [T, D2]
        s = s_ref[...].astype(jnp.float32)                  # [T, D2]
        w = w_ref[...]                                      # [T, 1]  mask / clamp(mask_sum, 1)

        # teacher-patch sum for the EMA center2 update
        csum_acc[...] += jnp.sum(t, axis=0, keepdims=True)

        inv_temp2 = scal_ref[0]
        tz = (t - c2_ref[...]) * inv_temp2
        te = jnp.exp(tz - jnp.max(tz, axis=-1, keepdims=True))
        z = jnp.sum(te, axis=-1, keepdims=True)             # [T, 1]

        ss = s * inv_student_temp
        m = jnp.max(ss, axis=-1, keepdims=True)
        lse = m + jnp.log(jnp.sum(jnp.exp(ss - m), axis=-1, keepdims=True))  # [T, 1]

        # sum(-softmax(t) * log_softmax(s)) == lse(s) - sum(exp(t)*s) / sum(exp(t))
        dot = jnp.sum(te * ss, axis=-1, keepdims=True)
        ce = lse - dot / z                                  # exact teacher normalisation
        loss_acc[...] += jnp.sum(ce * w)

    if guard:
        # 2-way core split over-covers the tile range by one step: skip it entirely
        # (its DMA is clamped to the last valid tile by the index_map).
        pl.when(o * n_inner + i < n_tiles)(_compute)
    else:
        _compute()

    @pl.when(i == n_inner - 1)
    def _finalize():
        loss2_ref[0] = loss_acc[...]
        csum_ref[0] = csum_acc[...]


# --------------------------------------------------------------------------------------
# Wrapper module
# --------------------------------------------------------------------------------------
class IBotLossPallas:
    """JAX / Pallas TPU port of iBOTLoss (single device, functional center state)."""

    def __init__(self, out_dim, patch_out_dim, n_g_crops, n_l_crops,
                 warmup_teacher_temp, teacher_temp,
                 warmup_teacher_patch_temp, teacher_patch_temp,
                 warmup_teacher_temp_epochs, n_epochs,
                 student_temp=0.1, center_momentum=0.9, center_momentum2=0.9,
                 lambda1=1.0, lambda2=1.0, mim_start_epoch=0,
                 patch_tile_rows=None):
        warmup_teacher_temp_epochs = min(n_epochs, warmup_teacher_temp_epochs)
        self.student_temp = student_temp
        self.center_momentum = center_momentum
        self.center_momentum2 = center_momentum2
        self.n_g_crops = n_g_crops
        self.n_l_crops = n_l_crops
        self.n_crops = n_g_crops + n_l_crops
        self.lambda1 = lambda1
        self.lambda2 = lambda2
        self.patch_tile_rows = patch_tile_rows
        # buffers (zeros, as in the reference); updated functionally through the jit.
        self.center = jnp.zeros((1, out_dim), jnp.float32)
        self.center2 = jnp.zeros((1, 1, patch_out_dim), jnp.float32)
        self.teacher_temp_schedule = np.concatenate((
            np.linspace(warmup_teacher_temp, teacher_temp, warmup_teacher_temp_epochs),
            np.ones(n_epochs - warmup_teacher_temp_epochs) * teacher_temp))
        if mim_start_epoch == 0:
            self.teacher_temp2_schedule = np.concatenate((
                np.linspace(warmup_teacher_patch_temp, teacher_patch_temp,
                            warmup_teacher_temp_epochs),
                np.ones(n_epochs - warmup_teacher_temp_epochs) * teacher_patch_temp))
        else:
            self.teacher_temp2_schedule = np.concatenate((
                np.ones(mim_start_epoch) * warmup_teacher_patch_temp,
                np.linspace(warmup_teacher_patch_temp, teacher_patch_temp,
                            warmup_teacher_temp_epochs),
                np.ones(n_epochs - warmup_teacher_temp_epochs - mim_start_epoch)
                * teacher_patch_temp))
        # single jit over both pallas_calls + mask prep + loss combine + EMA centers.
        self._fwd = jax.jit(self._forward)

    # ------------------------------------------------------------------ public API
    def __call__(self, student_output, teacher_output, student_local_cls,
                 student_mask, epoch):
        student_cls, student_patch = student_output
        teacher_cls, teacher_patch = teacher_output
        if student_local_cls is not None:
            student_cls = jnp.concatenate([student_cls, student_local_cls], axis=0)
        # epoch indexes a host-side numpy schedule -> must be a static Python int.
        inv_temp = jnp.asarray(
            [1.0 / float(self.teacher_temp_schedule[int(epoch)])], jnp.float32)
        inv_temp2 = jnp.asarray(
            [1.0 / float(self.teacher_temp2_schedule[int(epoch)])], jnp.float32)
        loss1, loss2, total, new_center, new_center2 = self._fwd(
            student_cls, student_patch, teacher_cls, teacher_patch,
            jnp.asarray(student_mask), inv_temp, inv_temp2,
            self.center, self.center2)
        self.center, self.center2 = new_center, new_center2
        return dict(cls=loss1, patch=loss2, loss=total)

    # ------------------------------------------------------------------ jitted body
    def _forward(self, student_cls, student_patch, teacher_cls, teacher_patch,
                 student_mask, inv_temp, inv_temp2, center, center2):
        n_g, n_crops = self.n_g_crops, self.n_crops
        inv_stemp = 1.0 / float(self.student_temp)
        vmem_cap = _vmem_budget_bytes()
        smem_spec = pl.BlockSpec(memory_space=pltpu.MemorySpace.SMEM)

        gb, n_patches, d2 = teacher_patch.shape
        batch = gb // n_g
        out_dim = teacher_cls.shape[-1]

        # ----------------- [CLS] cross-entropy + cls-center sum -----------------
        t_cls = teacher_cls.reshape(n_g, batch, out_dim)        # metadata-only reshapes
        s_cls = student_cls.reshape(n_crops, batch, out_dim)
        bt = _pick_batch_tile(batch, out_dim, n_g, vmem_cap)
        n_bt = batch // bt

        loss1_parts, cls_sum_parts = pl.pallas_call(
            functools.partial(_cls_kernel, n_g=n_g, n_crops=n_crops,
                              inv_student_temp=inv_stemp),
            out_shape=(jax.ShapeDtypeStruct((n_bt, 1, 1), jnp.float32),
                       jax.ShapeDtypeStruct((n_bt, 1, out_dim), jnp.float32)),
            grid=(n_bt, n_crops),
            in_specs=[smem_spec,
                      pl.BlockSpec((n_g, bt, out_dim), lambda b, v: (0, b, 0)),
                      pl.BlockSpec((1, bt, out_dim), lambda b, v: (v, b, 0)),
                      pl.BlockSpec((1, out_dim), lambda b, v: (0, 0))],
            out_specs=(pl.BlockSpec((1, 1, 1), lambda b, v: (b, 0, 0)),
                       pl.BlockSpec((1, 1, out_dim), lambda b, v: (b, 0, 0))),
            scratch_shapes=[pltpu.VMEM((n_g, bt, out_dim), jnp.float32),
                            pltpu.VMEM((1, 1), jnp.float32),
                            pltpu.VMEM((1, out_dim), jnp.float32)],
            compiler_params=pltpu.CompilerParams(
                dimension_semantics=("parallel", "arbitrary"),
                vmem_limit_bytes=vmem_cap),
        )(inv_temp, t_cls, s_cls, center)

        # ----------------- masked patch MIM loss + patch-center sum -----------------
        n_rows = gb * n_patches
        t_p = teacher_patch.reshape(n_rows, d2)
        s_p = student_patch.reshape(n_rows, d2)
        c2 = center2.reshape(1, d2)

        # per-token weight = mask / clamp(per-sample mask sum, 1)  (tiny tensor)
        mask_f = student_mask.reshape(gb, n_patches).astype(jnp.float32)
        denom = jnp.maximum(jnp.sum(mask_f, axis=-1, keepdims=True), 1.0)
        w = (mask_f / denom).reshape(n_rows, 1)

        tile_rows, padded_rows = _pick_patch_tiling(
            n_rows, d2, vmem_cap, self.patch_tile_rows)
        if padded_rows > n_rows:
            pad = padded_rows - n_rows
            t_p = jnp.pad(t_p, ((0, pad), (0, 0)))   # zero rows: 0 center-sum, 0 loss (w=0)
            s_p = jnp.pad(s_p, ((0, pad), (0, 0)))
            w = jnp.pad(w, ((0, pad), (0, 0)))
        n_tiles = padded_rows // tile_rows
        if n_tiles >= 2:
            n_par, n_inner = 2, (n_tiles + 1) // 2   # always feed both v7x TensorCores
        else:
            n_par, n_inner = 1, 1
        guard = (n_par * n_inner) != n_tiles         # odd tile count -> skip last step

        if guard:
            last = n_tiles - 1
            row_map = lambda o, i: (jnp.minimum(o * n_inner + i, last), 0)
        else:
            row_map = lambda o, i: (o * n_inner + i, 0)

        loss2_parts, patch_sum_parts = pl.pallas_call(
            functools.partial(_patch_kernel, n_inner=n_inner, n_tiles=n_tiles,
                              guard=guard, inv_student_temp=inv_stemp),
            out_shape=(jax.ShapeDtypeStruct((n_par, 1, 1), jnp.float32),
                       jax.ShapeDtypeStruct((n_par, 1, d2), jnp.float32)),
            grid=(n_par, n_inner),
            in_specs=[smem_spec,
                      pl.BlockSpec((tile_rows, d2), row_map),
                      pl.BlockSpec((tile_rows, d2), row_map),
                      pl.BlockSpec((tile_rows, 1), row_map),
                      pl.BlockSpec((1, d2), lambda o, i: (0, 0))],
            out_specs=(pl.BlockSpec((1, 1, 1), lambda o, i: (o, 0, 0)),
                       pl.BlockSpec((1, 1, d2), lambda o, i: (o, 0, 0))),
            scratch_shapes=[pltpu.VMEM((1, 1), jnp.float32),
                            pltpu.VMEM((1, d2), jnp.float32)],
            compiler_params=pltpu.CompilerParams(
                dimension_semantics=("parallel", "arbitrary"),
                vmem_limit_bytes=vmem_cap),
        )(inv_temp2, t_p, s_p, w, c2)

        # ----------------- combine partials (tiny ops, fused by XLA) -----------------
        n_terms1 = n_g * (n_crops - 1)
        loss1 = jnp.sum(loss1_parts) / (batch * n_terms1) * self.lambda1
        loss2 = jnp.sum(loss2_parts) / (batch * n_g) * self.lambda2

        # EMA center updates (update_center in the reference).
        # TODO(synk): dist.all_reduce / world_size omitted -- single-device (world_size=1).
        cls_center = jnp.sum(cls_sum_parts, axis=0) / (n_g * batch)          # [1, K]
        new_center = (center * self.center_momentum
                      + cls_center * (1.0 - self.center_momentum))
        patch_center = jnp.sum(patch_sum_parts, axis=0) / float(n_rows)      # [1, D2]
        new_center2 = (center2.reshape(1, d2) * self.center_momentum2
                       + patch_center * (1.0 - self.center_momentum2)).reshape(1, 1, d2)
        return loss1, loss2, loss1 + loss2, new_center, new_center2


# --------------------------------------------------------------------------------------
# pure-JAX reference (mirrors the PyTorch module) for the correctness check
# --------------------------------------------------------------------------------------
def _reference(mod, student_cls_all, student_patch, teacher_cls, teacher_patch,
               student_mask, epoch, center, center2):
    n_g, n_crops = mod.n_g_crops, mod.n_crops
    temp = float(mod.teacher_temp_schedule[epoch])
    temp2 = float(mod.teacher_temp2_schedule[epoch])
    t_cls = teacher_cls.astype(jnp.float32)
    t_patch = teacher_patch.astype(jnp.float32)
    s_cls = student_cls_all.astype(jnp.float32) / mod.student_temp
    s_patch = student_patch.astype(jnp.float32) / mod.student_temp
    B = t_cls.shape[0] // n_g
    N = t_patch.shape[1]
    tc = jax.nn.softmax((t_cls - center) / temp, axis=-1).reshape(n_g, B, -1)
    sc = jax.nn.log_softmax(s_cls, axis=-1).reshape(n_crops, B, -1)
    tp = jax.nn.softmax((t_patch - center2) / temp2, axis=-1).reshape(n_g, B, N, -1)
    sp = jax.nn.log_softmax(s_patch, axis=-1).reshape(n_g, B, N, -1)
    mask = jnp.asarray(student_mask).reshape(n_g, B, N).astype(jnp.float32)
    total1, n1, total2, n2 = 0.0, 0, 0.0, 0
    for q in range(n_g):
        for v in range(n_crops):
            if v == q:
                l2 = jnp.sum(-tp[q] * sp[v], axis=-1)
                l2 = jnp.sum(l2 * mask[v], axis=-1) / jnp.maximum(
                    jnp.sum(mask[v], axis=-1), 1.0)
                total2 = total2 + jnp.mean(l2)
                n2 += 1
            else:
                l1 = jnp.sum(-tc[q] * sc[v], axis=-1)
                total1 = total1 + jnp.mean(l1)
                n1 += 1
    total1 = total1 / n1 * mod.lambda1
    total2 = total2 / n2 * mod.lambda2
    cls_center = jnp.sum(t_cls, axis=0, keepdims=True) / t_cls.shape[0]
    new_center = center * mod.center_momentum + cls_center * (1 - mod.center_momentum)
    patch_center = jnp.sum(jnp.mean(t_patch, axis=1), axis=0, keepdims=True) / t_patch.shape[0]
    new_center2 = center2 * mod.center_momentum2 + patch_center * (1 - mod.center_momentum2)
    return total1, total2, new_center, new_center2


if __name__ == "__main__":
    key = jax.random.PRNGKey(0)
    B = 2
    n_g, n_l = 2, 2
    out_dim = 128
    patch_out_dim = 128
    Hp = Wp = 4
    N = Hp * Wp
    n_epochs = 10

    k1, k2, k3, k4, k5, k6 = jax.random.split(key, 6)
    # inputs ingested in bf16; kernels cast to f32 in-VMEM (halves HBM traffic).
    teacher_cls = jax.random.normal(k1, (n_g * B, out_dim), jnp.float32).astype(jnp.bfloat16)
    teacher_patch = jax.random.normal(k2, (n_g * B, N, patch_out_dim), jnp.float32).astype(jnp.bfloat16)
    student_cls = jax.random.normal(k3, (n_g * B, out_dim), jnp.float32).astype(jnp.bfloat16)
    student_patch = jax.random.normal(k4, (n_g * B, N, patch_out_dim), jnp.float32).astype(jnp.bfloat16)
    student_local_cls = jax.random.normal(k5, (n_l * B, out_dim), jnp.float32).astype(jnp.bfloat16)
    student_mask = jax.random.bernoulli(k6, 0.5, (n_g, B, Hp, Wp))

    loss_mod = IBotLossPallas(
        out_dim=out_dim, patch_out_dim=patch_out_dim,
        n_g_crops=n_g, n_l_crops=n_l,
        warmup_teacher_temp=0.04, teacher_temp=0.07,
        warmup_teacher_patch_temp=0.04, teacher_patch_temp=0.07,
        warmup_teacher_temp_epochs=5, n_epochs=n_epochs,
        patch_tile_rows=16)   # small tile -> exercises the 2-way (parallel) row split

    epoch = 3
    center0, center2_0 = loss_mod.center, loss_mod.center2
    out = loss_mod((student_cls, student_patch),
                   (teacher_cls, teacher_patch),
                   student_local_cls, student_mask, epoch)
    jax.block_until_ready(out["loss"])

    # correctness check against a pure-JAX reference of the PyTorch module
    s_cls_all = jnp.concatenate([student_cls, student_local_cls], axis=0)
    ref1, ref2, ref_c, ref_c2 = _reference(
        loss_mod, s_cls_all, student_patch, teacher_cls, teacher_patch,
        student_mask, epoch, center0, center2_0)
    np.testing.assert_allclose(np.asarray(out["cls"]), np.asarray(ref1), rtol=2e-3, atol=2e-3)
    np.testing.assert_allclose(np.asarray(out["patch"]), np.asarray(ref2), rtol=2e-3, atol=2e-3)
    np.testing.assert_allclose(np.asarray(loss_mod.center), np.asarray(ref_c), rtol=2e-3, atol=2e-3)
    np.testing.assert_allclose(np.asarray(loss_mod.center2), np.asarray(ref_c2), rtol=2e-3, atol=2e-3)

    print("KERNEL_OK")
</pallas_src>

<mosaic_0001>
module attributes {stable_mosaic.version = 11 : i64} {
  func.func @_patch_kernel(%arg0: i32, %arg1: i32, %arg2: memref<1xf32, #tpu.memory_space<smem>>, %arg3: memref<16x128xbf16, #tpu.memory_space<vmem>>, %arg4: memref<16x128xbf16, #tpu.memory_space<vmem>>, %arg5: memref<16x1xf32, #tpu.memory_space<vmem>>, %arg6: memref<1x128xf32, #tpu.memory_space<vmem>>, %arg7: memref<1x1x1xf32, #tpu.memory_space<vmem>>, %arg8: memref<1x1x128xf32, #tpu.memory_space<vmem>>, %arg9: memref<1x1xf32, #tpu.memory_space<vmem>>, %arg10: memref<1x128xf32, #tpu.memory_space<vmem>>) attributes {dimension_semantics = [#tpu.dimension_semantics<parallel>, #tpu.dimension_semantics<arbitrary>], iteration_bounds = array<i64: 2, 2>, scalar_prefetch = 0 : i64, scratch_operands = 2 : i64, tpu.core_type = #tpu.core_type<tc>, window_params = [{transform_indices = @transform_0, window_bounds = array<i64: 1>}, {transform_indices = @transform_1, window_bounds = array<i64: 16, 128>}, {transform_indices = @transform_2, window_bounds = array<i64: 16, 128>}, {transform_indices = @transform_3, window_bounds = array<i64: 16, 1>}, {pipeline_mode = #tpu.pipeline_mode<synchronous>, transform_indices = @transform_4, window_bounds = array<i64: 1, 128>}, {transform_indices = @transform_5, window_bounds = array<i64: 1, 1, 1>}, {transform_indices = @transform_6, window_bounds = array<i64: 1, 1, 128>}]} {
    %c0_i32 = arith.constant 0 : i32
    %0 = arith.cmpi eq, %arg1, %c0_i32 : i32
    %1 = arith.extui %0 : i1 to i32
    %c0_i32_0 = arith.constant 0 : i32
    %2 = arith.cmpi ne, %1, %c0_i32_0 : i32
    scf.if %2 {
      %cst_25 = arith.constant 0.000000e+00 : f32
      %54 = vector.broadcast %cst_25 : f32 to vector<1x1xf32>
      %c0_26 = arith.constant 0 : index
      %c0_27 = arith.constant 0 : index
      %55 = vector.load %arg9[%c0_26, %c0_27] : memref<1x1xf32, #tpu.memory_space<vmem>>, vector<1x1xf32>
      tpu.vector_store %arg9[%c0_26, %c0_27], %54 {strides = array<i32>} : memref<1x1xf32, #tpu.memory_space<vmem>>, vector<1x1xf32>,
      %cst_28 = arith.constant 0.000000e+00 : f32
      %56 = vector.broadcast %cst_28 : f32 to vector<1x128xf32>
      %c0_29 = arith.constant 0 : index
      %c0_30 = arith.constant 0 : index
      %57 = vector.load %arg10[%c0_29, %c0_30] : memref<1x128xf32, #tpu.memory_space<vmem>>, vector<1x128xf32>
      tpu.vector_store %arg10[%c0_29, %c0_30], %56 {strides = array<i32>} : memref<1x128xf32, #tpu.memory_space<vmem>>, vector<1x128xf32>,
    } else {
    }
    %c0 = arith.constant 0 : index
    %c0_1 = arith.constant 0 : index
    %3 = vector.load %arg3[%c0, %c0_1] : memref<16x128xbf16, #tpu.memory_space<vmem>>, vector<16x128xbf16>
    %4 = arith.extf %3 : vector<16x128xbf16> to vector<16x128xf32>
    %c0_2 = arith.constant 0 : index
    %c0_3 = arith.constant 0 : index
    %5 = vector.load %arg4[%c0_2, %c0_3] : memref<16x128xbf16, #tpu.memory_space<vmem>>, vector<16x128xbf16>
    %6 = arith.extf %5 : vector<16x128xbf16> to vector<16x128xf32>
    %c0_4 = arith.constant 0 : index
    %c0_5 = arith.constant 0 : index
    %7 = vector.load %arg5[%c0_4, %c0_5] : memref<16x1xf32, #tpu.memory_space<vmem>>, vector<16x1xf32>
    %c0_6 = arith.constant 0 : index
    %c0_7 = arith.constant 0 : index
    %8 = vector.load %arg10[%c0_6, %c0_7] : memref<1x128xf32, #tpu.memory_space<vmem>>, vector<1x128xf32>
    %cst = arith.constant dense<0.000000e+00> : vector<128xf32>
    %9 = vector.multi_reduction <add>, %4, %cst [0] : vector<16x128xf32> to vector<128xf32>
    %10 = vector.shape_cast %9 : vector<128xf32> to vector<1x128xf32>
    %11 = arith.addf %8, %10 : vector<1x128xf32>
    %c0_8 = arith.constant 0 : index
    %c0_9 = arith.constant 0 : index
    %12 = vector.load %arg10[%c0_8, %c0_9] : memref<1x128xf32, #tpu.memory_space<vmem>>, vector<1x128xf32>
    tpu.vector_store %arg10[%c0_8, %c0_9], %11 {strides = array<i32>} : memref<1x128xf32, #tpu.memory_space<vmem>>, vector<1x128xf32>,
    %c0_10 = arith.constant 0 : index
    %13 = memref.load %arg2[%c0_10] : memref<1xf32, #tpu.memory_space<smem>>
    %c0_11 = arith.constant 0 : index
    %c0_12 = arith.constant 0 : index
    %14 = vector.load %arg6[%c0_11, %c0_12] : memref<1x128xf32, #tpu.memory_space<vmem>>, vector<1x128xf32>
    %15 = vector.broadcast %14 : vector<1x128xf32> to vector<16x128xf32>
    %16 = arith.subf %4, %15 : vector<16x128xf32>
    %17 = vector.broadcast %13 : f32 to vector<16x128xf32>
    %18 = arith.mulf %16, %17 : vector<16x128xf32>
    %cst_13 = arith.constant dense<0xFF800000> : vector<16xf32>
    %19 = vector.multi_reduction <maximumf>, %18, %cst_13 [1] : vector<16x128xf32> to vector<16xf32>
    %20 = vector.shape_cast %19 : vector<16xf32> to vector<16x1xf32>
    %21 = vector.broadcast %20 : vector<16x1xf32> to vector<16x128xf32>
    %22 = arith.subf %18, %21 : vector<16x128xf32>
    %23 = math.exp %22 : vector<16x128xf32>
    %cst_14 = arith.constant dense<0.000000e+00> : vector<16xf32>
    %24 = vector.multi_reduction <add>, %23, %cst_14 [1] : vector<16x128xf32> to vector<16xf32>
    %25 = vector.shape_cast %24 : vector<16xf32> to vector<16x1xf32>
    %cst_15 = arith.constant 1.000000e+01 : f32
    %26 = vector.broadcast %cst_15 : f32 to vector<16x128xf32>
    %27 = arith.mulf %6, %26 : vector<16x128xf32>
    %cst_16 = arith.constant dense<0xFF800000> : vector<16xf32>
    %28 = vector.multi_reduction <maximumf>, %27, %cst_16 [1] : vector<16x128xf32> to vector<16xf32>
    %29 = vector.shape_cast %28 : vector<16xf32> to vector<16x1xf32>
    %30 = vector.broadcast %29 : vector<16x1xf32> to vector<16x128xf32>
    %31 = arith.subf %27, %30 : vector<16x128xf32>
    %32 = math.exp %31 : vector<16x128xf32>
    %cst_17 = arith.constant dense<0.000000e+00> : vector<16xf32>
    %33 = vector.multi_reduction <add>, %32, %cst_17 [1] : vector<16x128xf32> to vector<16xf32>
    %34 = vector.shape_cast %33 : vector<16xf32> to vector<16x1xf32>
    %35 = math.log %34 : vector<16x1xf32>
    %36 = arith.addf %29, %35 : vector<16x1xf32>
    %37 = arith.mulf %23, %27 : vector<16x128xf32>
    %cst_18 = arith.constant dense<0.000000e+00> : vector<16xf32>
    %38 = vector.multi_reduction <add>, %37, %cst_18 [1] : vector<16x128xf32> to vector<16xf32>
    %39 = vector.shape_cast %38 : vector<16xf32> to vector<16x1xf32>
    %40 = arith.divf %39, %25 : vector<16x1xf32>
    %41 = arith.subf %36, %40 : vector<16x1xf32>
    %c0_19 = arith.constant 0 : index
    %c0_20 = arith.constant 0 : index
    %42 = vector.load %arg9[%c0_19, %c0_20] : memref<1x1xf32, #tpu.memory_space<vmem>>, vector<1x1xf32>
    %43 = arith.mulf %41, %7 : vector<16x1xf32>
    %44 = vector.shape_cast %43 : vector<16x1xf32> to vector<1x16x1xf32>
    %cst_21 = arith.constant dense<0.000000e+00> : vector<1xf32>
    %45 = vector.multi_reduction <add>, %44, %cst_21 [1, 2] : vector<1x16x1xf32> to vector<1xf32>
    %46 = vector.shape_cast %45 : vector<1xf32> to vector<1x1x1xf32>
    %47 = vector.extract %46[0, 0, 0] : f32 from vector<1x1x1xf32>
    %48 = vector.broadcast %47 : f32 to vector<1x1xf32>
    %49 = arith.addf %42, %48 : vector<1x1xf32>
    %c0_22 = arith.constant 0 : index
    %c0_23 = arith.constant 0 : index
    %50 = vector.load %arg9[%c0_22, %c0_23] : memref<1x1xf32, #tpu.memory_space<vmem>>, vector<1x1xf32>
    tpu.vector_store %arg9[%c0_22, %c0_23], %49 {strides = array<i32>} : memref<1x1xf32, #tpu.memory_space<vmem>>, vector<1x1xf32>,
    %c1_i32 = arith.constant 1 : i32
    %51 = arith.cmpi eq, %arg1, %c1_i32 : i32
    %52 = arith.extui %51 : i1 to i32
    %c0_i32_24 = arith.constant 0 : i32
    %53 = arith.cmpi ne, %52, %c0_i32_24 : i32
    scf.if %53 {
      %c0_25 = arith.constant 0 : index
      %c0_26 = arith.constant 0 : index
      %54 = vector.load %arg9[%c0_25, %c0_26] : memref<1x1xf32, #tpu.memory_space<vmem>>, vector<1x1xf32>
      %c0_27 = arith.constant 0 : index
      %c0_28 = arith.constant 0 : index
      %c0_29 = arith.constant 0 : index
      %55 = vector.load %arg7[%c0_27, %c0_28, %c0_29] : memref<1x1x1xf32, #tpu.memory_space<vmem>>, vector<1x1x1xf32>
      %56 = vector.shape_cast %55 : vector<1x1x1xf32> to vector<1x1xf32>
      %57 = vector.shape_cast %54 : vector<1x1xf32> to vector<1x1x1xf32>
      tpu.vector_store %arg7[%c0_27, %c0_28, %c0_29], %57 {strides = array<i32>} : memref<1x1x1xf32, #tpu.memory_space<vmem>>, vector<1x1x1xf32>,
      %c0_30 = arith.constant 0 : index
      %c0_31 = arith.constant 0 : index
      %58 = vector.load %arg10[%c0_30, %c0_31] : memref<1x128xf32, #tpu.memory_space<vmem>>, vector<1x128xf32>
      %c0_32 = arith.constant 0 : index
      %c0_33 = arith.constant 0 : index
      %c0_34 = arith.constant 0 : index
      %59 = vector.load %arg8[%c0_32, %c0_33, %c0_34] : memref<1x1x128xf32, #tpu.memory_space<vmem>>, vector<1x1x128xf32>
      %60 = vector.shape_cast %59 : vector<1x1x128xf32> to vector<1x128xf32>
      %61 = vector.shape_cast %58 : vector<1x128xf32> to vector<1x1x128xf32>
      tpu.vector_store %arg8[%c0_32, %c0_33, %c0_34], %61 {strides = array<i32>} : memref<1x1x128xf32, #tpu.memory_space<vmem>>, vector<1x1x128xf32>,
    } else {
    }
    return
  }
  func.func @transform_0(%arg0: i32, %arg1: i32) -> i32 {
    %c0_i32 = arith.constant 0 : i32
    %c0_i32_0 = arith.constant 0 : i32
    return %c0_i32 : i32
  }
  func.func @transform_1(%arg0: i32, %arg1: i32) -> (i32, i32) {
    %c2_i32 = arith.constant 2 : i32
    %0 = arith.muli %arg0, %c2_i32 : i32
    %1 = arith.addi %0, %arg1 : i32
    %c0_i32 = arith.constant 0 : i32
    %c0_i32_0 = arith.constant 0 : i32
    return %1, %c0_i32 : i32, i32
  }
  func.func @transform_2(%arg0: i32, %arg1: i32) -> (i32, i32) {
    %c2_i32 = arith.constant 2 : i32
    %0 = arith.muli %arg0, %c2_i32 : i32
    %1 = arith.addi %0, %arg1 : i32
    %c0_i32 = arith.constant 0 : i32
    %c0_i32_0 = arith.constant 0 : i32
    return %1, %c0_i32 : i32, i32
  }
  func.func @transform_3(%arg0: i32, %arg1: i32) -> (i32, i32) {
    %c2_i32 = arith.constant 2 : i32
    %0 = arith.muli %arg0, %c2_i32 : i32
    %1 = arith.addi %0, %arg1 : i32
    %c0_i32 = arith.constant 0 : i32
    %c0_i32_0 = arith.constant 0 : i32
    return %1, %c0_i32 : i32, i32
  }
  func.func @transform_4(%arg0: i32, %arg1: i32) -> (i32, i32) {
    %c0_i32 = arith.constant 0 : i32
    %c0_i32_0 = arith.constant 0 : i32
    %c0_i32_1 = arith.constant 0 : i32
    return %c0_i32, %c0_i32_0 : i32, i32
  }
  func.func @transform_5(%arg0: i32, %arg1: i32) -> (i32, i32, i32) {
    %c0_i32 = arith.constant 0 : i32
    %c0_i32_0 = arith.constant 0 : i32
    %c0_i32_1 = arith.constant 0 : i32
    return %arg0, %c0_i32, %c0_i32_0 : i32, i32, i32
  }
  func.func @transform_6(%arg0: i32, %arg1: i32) -> (i32, i32, i32) {
    %c0_i32 = arith.constant 0 : i32
    %c0_i32_0 = arith.constant 0 : i32
    %c0_i32_1 = arith.constant 0 : i32
    return %arg0, %c0_i32, %c0_i32_0 : i32, i32, i32
  }
}

module attributes {stable_mosaic.version = 11 : i64} {
  func.func @_cls_kernel(%arg0: i32, %arg1: i32, %arg2: memref<1xf32, #tpu.memory_space<smem>>, %arg3: memref<2x2x128xbf16, #tpu.memory_space<vmem>>, %arg4: memref<1x2x128xbf16, #tpu.memory_space<vmem>>, %arg5: memref<1x128xf32, #tpu.memory_space<vmem>>, %arg6: memref<1x1x1xf32, #tpu.memory_space<vmem>>, %arg7: memref<1x1x128xf32, #tpu.memory_space<vmem>>, %arg8: memref<2x2x128xf32, #tpu.memory_space<vmem>>, %arg9: memref<1x1xf32, #tpu.memory_space<vmem>>, %arg10: memref<1x128xf32, #tpu.memory_space<vmem>>) attributes {dimension_semantics = [#tpu.dimension_semantics<parallel>, #tpu.dimension_semantics<arbitrary>], iteration_bounds = array<i64: 1, 4>, scalar_prefetch = 0 : i64, scratch_operands = 3 : i64, tpu.core_type = #tpu.core_type<tc>, window_params = [{transform_indices = @transform_0, window_bounds = array<i64: 1>}, {transform_indices = @transform_1, window_bounds = array<i64: 2, 2, 128>}, {transform_indices = @transform_2, window_bounds = array<i64: 1, 2, 128>}, {pipeline_mode = #tpu.pipeline_mode<synchronous>, transform_indices = @transform_3, window_bounds = array<i64: 1, 128>}, {transform_indices = @transform_4, window_bounds = array<i64: 1, 1, 1>}, {transform_indices = @transform_5, window_bounds = array<i64: 1, 1, 128>}]} {
    %c0_i32 = arith.constant 0 : i32
    %0 = arith.cmpi eq, %arg1, %c0_i32 : i32
    %1 = arith.extui %0 : i1 to i32
    %c0_i32_0 = arith.constant 0 : i32
    %2 = arith.cmpi ne, %1, %c0_i32_0 : i32
    scf.if %2 {
      %cst_9 = arith.constant 0.000000e+00 : f32
      %26 = vector.broadcast %cst_9 : f32 to vector<1x1xf32>
      %c0_10 = arith.constant 0 : index
      %c0_11 = arith.constant 0 : index
      %27 = vector.load %arg9[%c0_10, %c0_11] : memref<1x1xf32, #tpu.memory_space<vmem>>, vector<1x1xf32>
      tpu.vector_store %arg9[%c0_10, %c0_11], %26 {strides = array<i32>} : memref<1x1xf32, #tpu.memory_space<vmem>>, vector<1x1xf32>,
      %c0_12 = arith.constant 0 : index
      %28 = memref.load %arg2[%c0_12] : memref<1xf32, #tpu.memory_space<smem>>
      %c0_13 = arith.constant 0 : index
      %c0_14 = arith.constant 0 : index
      %29 = vector.load %arg5[%c0_13, %c0_14] : memref<1x128xf32, #tpu.memory_space<vmem>>, vector<1x128xf32>
      %c0_15 = arith.constant 0 : index
      %c0_16 = arith.constant 0 : index
      %c0_17 = arith.constant 0 : index
      %30 = vector.load %arg3[%c0_15, %c0_16, %c0_17] : memref<2x2x128xbf16, #tpu.memory_space<vmem>>, vector<1x2x128xbf16>
      %31 = vector.shape_cast %30 : vector<1x2x128xbf16> to vector<2x128xbf16>
      %32 = arith.extf %31 : vector<2x128xbf16> to vector<2x128xf32>
      %cst_18 = arith.constant dense<0.000000e+00> : vector<128xf32>
      %33 = vector.multi_reduction <add>, %32, %cst_18 [0] : vector<2x128xf32> to vector<128xf32>
      %34 = vector.shape_cast %33 : vector<128xf32> to vector<1x128xf32>
      %35 = vector.broadcast %29 : vector<1x128xf32> to vector<2x128xf32>
      %36 = arith.subf %32, %35 : vector<2x128xf32>
      %37 = vector.broadcast %28 : f32 to vector<2x128xf32>
      %38 = arith.mulf %36, %37 : vector<2x128xf32>
      %cst_19 = arith.constant dense<0xFF800000> : vector<2xf32>
      %39 = vector.multi_reduction <maximumf>, %38, %cst_19 [1] : vector<2x128xf32> to vector<2xf32>
      %40 = vector.shape_cast %39 : vector<2xf32> to vector<2x1xf32>
      %41 = vector.broadcast %40 : vector<2x1xf32> to vector<2x128xf32>
      %42 = arith.subf %38, %41 : vector<2x128xf32>
      %43 = math.exp %42 : vector<2x128xf32>
      %cst_20 = arith.constant dense<0.000000e+00> : vector<2xf32>
      %44 = vector.multi_reduction <add>, %43, %cst_20 [1] : vector<2x128xf32> to vector<2xf32>
      %45 = vector.shape_cast %44 : vector<2xf32> to vector<2x1xf32>
      %46 = vector.broadcast %45 : vector<2x1xf32> to vector<2x128xf32>
      %47 = arith.divf %43, %46 : vector<2x128xf32>
      %c0_21 = arith.constant 0 : index
      %c0_22 = arith.constant 0 : index
      %c0_23 = arith.constant 0 : index
      %48 = vector.load %arg8[%c0_21, %c0_22, %c0_23] : memref<2x2x128xf32, #tpu.memory_space<vmem>>, vector<1x2x128xf32>
      %49 = vector.shape_cast %48 : vector<1x2x128xf32> to vector<2x128xf32>
      %50 = vector.shape_cast %47 : vector<2x128xf32> to vector<1x2x128xf32>
      tpu.vector_store %arg8[%c0_21, %c0_22, %c0_23], %50 {strides = array<i32>} : memref<2x2x128xf32, #tpu.memory_space<vmem>>, vector<1x2x128xf32>,
      %c1 = arith.constant 1 : index
      %c0_24 = arith.constant 0 : index
      %c0_25 = arith.constant 0 : index
      %51 = vector.load %arg3[%c1, %c0_24, %c0_25] : memref<2x2x128xbf16, #tpu.memory_space<vmem>>, vector<1x2x128xbf16>
      %52 = vector.shape_cast %51 : vector<1x2x128xbf16> to vector<2x128xbf16>
      %53 = arith.extf %52 : vector<2x128xbf16> to vector<2x128xf32>
      %cst_26 = arith.constant dense<0.000000e+00> : vector<128xf32>
      %54 = vector.multi_reduction <add>, %53, %cst_26 [0] : vector<2x128xf32> to vector<128xf32>
      %55 = vector.shape_cast %54 : vector<128xf32> to vector<1x128xf32>
      %56 = arith.addf %34, %55 : vector<1x128xf32>
      %57 = vector.broadcast %29 : vector<1x128xf32> to vector<2x128xf32>
      %58 = arith.subf %53, %57 : vector<2x128xf32>
      %59 = vector.broadcast %28 : f32 to vector<2x128xf32>
      %60 = arith.mulf %58, %59 : vector<2x128xf32>
      %cst_27 = arith.constant dense<0xFF800000> : vector<2xf32>
      %61 = vector.multi_reduction <maximumf>, %60, %cst_27 [1] : vector<2x128xf32> to vector<2xf32>
      %62 = vector.shape_cast %61 : vector<2xf32> to vector<2x1xf32>
      %63 = vector.broadcast %62 : vector<2x1xf32> to vector<2x128xf32>
      %64 = arith.subf %60, %63 : vector<2x128xf32>
      %65 = math.exp %64 : vector<2x128xf32>
      %cst_28 = arith.constant dense<0.000000e+00> : vector<2xf32>
      %66 = vector.multi_reduction <add>, %65, %cst_28 [1] : vector<2x128xf32> to vector<2xf32>
      %67 = vector.shape_cast %66 : vector<2xf32> to vector<2x1xf32>
      %68 = vector.broadcast %67 : vector<2x1xf32> to vector<2x128xf32>
      %69 = arith.divf %65, %68 : vector<2x128xf32>
      %c1_29 = arith.constant 1 : index
      %c0_30 = arith.constant 0 : index
      %c0_31 = arith.constant 0 : index
      %70 = vector.load %arg8[%c1_29, %c0_30, %c0_31] : memref<2x2x128xf32, #tpu.memory_space<vmem>>, vector<1x2x128xf32>
      %71 = vector.shape_cast %70 : vector<1x2x128xf32> to vector<2x128xf32>
      %72 = vector.shape_cast %69 : vector<2x128xf32> to vector<1x2x128xf32>
      tpu.vector_store %arg8[%c1_29, %c0_30, %c0_31], %72 {strides = array<i32>} : memref<2x2x128xf32, #tpu.memory_space<vmem>>, vector<1x2x128xf32>,
      %c0_32 = arith.constant 0 : index
      %c0_33 = arith.constant 0 : index
      %73 = vector.load %arg10[%c0_32, %c0_33] : memref<1x128xf32, #tpu.memory_space<vmem>>, vector<1x128xf32>
      tpu.vector_store %arg10[%c0_32, %c0_33], %56 {strides = array<i32>} : memref<1x128xf32, #tpu.memory_space<vmem>>, vector<1x128xf32>,
    } else {
    }
    %c0 = arith.constant 0 : index
    %c0_1 = arith.constant 0 : index
    %c0_2 = arith.constant 0 : index
    %3 = vector.load %arg4[%c0, %c0_1, %c0_2] : memref<1x2x128xbf16, #tpu.memory_space<vmem>>, vector<1x2x128xbf16>
    %4 = vector.shape_cast %3 : vector<1x2x128xbf16> to vector<2x128xbf16>
    %5 = arith.extf %4 : vector<2x128xbf16> to vector<2x128xf32>
    %cst = arith.constant 1.000000e+01 : f32
    %6 = vector.broadcast %cst : f32 to vector<2x128xf32>
    %7 = arith.mulf %5, %6 : vector<2x128xf32>
    %cst_3 = arith.constant dense<0xFF800000> : vector<2xf32>
    %8 = vector.multi_reduction <maximumf>, %7, %cst_3 [1] : vector<2x128xf32> to vector<2xf32>
    %9 = vector.shape_cast %8 : vector<2xf32> to vector<2x1xf32>
    %10 = vector.broadcast %9 : vector<2x1xf32> to vector<2x128xf32>
    %11 = arith.subf %7, %10 : vector<2x128xf32>
    %12 = math.exp %11 : vector<2x128xf32>
    %cst_4 = arith.constant dense<0.000000e+00> : vector<2xf32>
    %13 = vector.multi_reduction <add>, %12, %cst_4 [1] : vector<2x128xf32> to vector<2xf32>
    %14 = vector.shape_cast %13 : vector<2xf32> to vector<2x1xf32>
    %15 = math.log %14 : vector<2x1xf32>
    %16 = arith.addf %9, %15 : vector<2x1xf32>
    %c0_i32_5 = arith.constant 0 : i32
    %17 = arith.cmpi ne, %arg1, %c0_i32_5 : i32
    %18 = arith.extui %17 : i1 to i32
    %c0_i32_6 = arith.constant 0 : i32
    %19 = arith.cmpi ne, %18, %c0_i32_6 : i32
    scf.if %19 {
      %c0_9 = arith.constant 0 : index
      %c0_10 = arith.constant 0 : index
      %c0_11 = arith.constant 0 : index
      %26 = vector.load %arg8[%c0_9, %c0_10, %c0_11] : memref<2x2x128xf32, #tpu.memory_space<vmem>>, vector<1x2x128xf32>
      %27 = vector.shape_cast %26 : vector<1x2x128xf32> to vector<2x128xf32>
      %28 = arith.mulf %27, %7 : vector<2x128xf32>
      %cst_12 = arith.constant dense<0.000000e+00> : vector<2xf32>
      %29 = vector.multi_reduction <add>, %28, %cst_12 [1] : vector<2x128xf32> to vector<2xf32>
      %30 = vector.shape_cast %29 : vector<2xf32> to vector<2x1xf32>
      %c0_13 = arith.constant 0 : index
      %c0_14 = arith.constant 0 : index
      %31 = vector.load %arg9[%c0_13, %c0_14] : memref<1x1xf32, #tpu.memory_space<vmem>>, vector<1x1xf32>
      %32 = arith.subf %16, %30 : vector<2x1xf32>
      %33 = vector.shape_cast %32 : vector<2x1xf32> to vector<1x2x1xf32>
      %cst_15 = arith.constant dense<0.000000e+00> : vector<1xf32>
      %34 = vector.multi_reduction <add>, %33, %cst_15 [1, 2] : vector<1x2x1xf32> to vector<1xf32>
      %35 = vector.shape_cast %34 : vector<1xf32> to vector<1x1x1xf32>
      %36 = vector.extract %35[0, 0, 0] : f32 from vector<1x1x1xf32>
      %37 = vector.broadcast %36 : f32 to vector<1x1xf32>
      %38 = arith.addf %31, %37 : vector<1x1xf32>
      %c0_16 = arith.constant 0 : index
      %c0_17 = arith.constant 0 : index
      %39 = vector.load %arg9[%c0_16, %c0_17] : memref<1x1xf32, #tpu.memory_space<vmem>>, vector<1x1xf32>
      tpu.vector_store %arg9[%c0_16, %c0_17], %38 {strides = array<i32>} : memref<1x1xf32, #tpu.memory_space<vmem>>, vector<1x1xf32>,
    } else {
    }
    %c1_i32 = arith.constant 1 : i32
    %20 = arith.cmpi ne, %arg1, %c1_i32 : i32
    %21 = arith.extui %20 : i1 to i32
    %c0_i32_7 = arith.constant 0 : i32
    %22 = arith.cmpi ne, %21, %c0_i32_7 : i32
    scf.if %22 {
      %c1 = arith.constant 1 : index
      %c0_9 = arith.constant 0 : index
      %c0_10 = arith.constant 0 : index
      %26 = vector.load %arg8[%c1, %c0_9, %c0_10] : memref<2x2x128xf32, #tpu.memory_space<vmem>>, vector<1x2x128xf32>
      %27 = vector.shape_cast %26 : vector<1x2x128xf32> to vector<2x128xf32>
      %28 = arith.mulf %27, %7 : vector<2x128xf32>
      %cst_11 = arith.constant dense<0.000000e+00> : vector<2xf32>
      %29 = vector.multi_reduction <add>, %28, %cst_11 [1] : vector<2x128xf32> to vector<2xf32>
      %30 = vector.shape_cast %29 : vector<2xf32> to vector<2x1xf32>
      %c0_12 = arith.constant 0 : index
      %c0_13 = arith.constant 0 : index
      %31 = vector.load %arg9[%c0_12, %c0_13] : memref<1x1xf32, #tpu.memory_space<vmem>>, vector<1x1xf32>
      %32 = arith.subf %16, %30 : vector<2x1xf32>
      %33 = vector.shape_cast %32 : vector<2x1xf32> to vector<1x2x1xf32>
      %cst_14 = arith.constant dense<0.000000e+00> : vector<1xf32>
      %34 = vector.multi_reduction <add>, %33, %cst_14 [1, 2] : vector<1x2x1xf32> to vector<1xf32>
      %35 = vector.shape_cast %34 : vector<1xf32> to vector<1x1x1xf32>
      %36 = vector.extract %35[0, 0, 0] : f32 from vector<1x1x1xf32>
      %37 = vector.broadcast %36 : f32 to vector<1x1xf32>
      %38 = arith.addf %31, %37 : vector<1x1xf32>
      %c0_15 = arith.constant 0 : index
      %c0_16 = arith.constant 0 : index
      %39 = vector.load %arg9[%c0_15, %c0_16] : memref<1x1xf32, #tpu.memory_space<vmem>>, vector<1x1xf32>
      tpu.vector_store %arg9[%c0_15, %c0_16], %38 {strides = array<i32>} : memref<1x1xf32, #tpu.memory_space<vmem>>, vector<1x1xf32>,
    } else {
    }
    %c3_i32 = arith.constant 3 : i32
    %23 = arith.cmpi eq, %arg1, %c3_i32 : i32
    %24 = arith.extui %23 : i1 to i32
    %c0_i32_8 = arith.constant 0 : i32
    %25 = arith.cmpi ne, %24, %c0_i32_8 : i32
    scf.if %25 {
      %c0_9 = arith.constant 0 : index
      %c0_10 = arith.constant 0 : index
      %26 = vector.load %arg9[%c0_9, %c0_10] : memref<1x1xf32, #tpu.memory_space<vmem>>, vector<1x1xf32>
      %c0_11 = arith.constant 0 : index
      %c0_12 = arith.constant 0 : index
      %c0_13 = arith.constant 0 : index
      %27 = vector.load %arg6[%c0_11, %c0_12, %c0_13] : memref<1x1x1xf32, #tpu.memory_space<vmem>>, vector<1x1x1xf32>
      %28 = vector.shape_cast %27 : vector<1x1x1xf32> to vector<1x1xf32>
      %29 = vector.shape_cast %26 : vector<1x1xf32> to vector<1x1x1xf32>
      tpu.vector_store %arg6[%c0_11, %c0_12, %c0_13], %29 {strides = array<i32>} : memref<1x1x1xf32, #tpu.memory_space<vmem>>, vector<1x1x1xf32>,
      %c0_14 = arith.constant 0 : index
      %c0_15 = arith.constant 0 : index
      %30 = vector.load %arg10[%c0_14, %c0_15] : memref<1x128xf32, #tpu.memory_space<vmem>>, vector<1x128xf32>
      %c0_16 = arith.constant 0 : index
      %c0_17 = arith.constant 0 : index
      %c0_18 = arith.constant 0 : index
      %31 = vector.load %arg7[%c0_16, %c0_17, %c0_18] : memref<1x1x128xf32, #tpu.memory_space<vmem>>, vector<1x1x128xf32>
      %32 = vector.shape_cast %31 : vector<1x1x128xf32> to vector<1x128xf32>
      %33 = vector.shape_cast %30 : vector<1x128xf32> to vector<1x1x128xf32>
      tpu.vector_store %arg7[%c0_16, %c0_17, %c0_18], %33 {strides = array<i32>} : memref<1x1x128xf32, #tpu.memory_space<vmem>>, vector<1x1x128xf32>,
    } else {
    }
    return
  }
  func.func @transform_0(%arg0: i32, %arg1: i32) -> i32 {
    %c0_i32 = arith.constant 0 : i32
    %c0_i32_0 = arith.constant 0 : i32
    return %c0_i32 : i32
  }
  func.func @transform_1(%arg0: i32, %arg1: i32) -> (i32, i32, i32) {
    %c0_i32 = arith.constant 0 : i32
    %c0_i32_0 = arith.constant 0 : i32
    %c0_i32_1 = arith.constant 0 : i32
    return %c0_i32, %arg0, %c0_i32_0 : i32, i32, i32
  }
  func.func @transform_2(%arg0: i32, %arg1: i32) -> (i32, i32, i32) {
    %c0_i32 = arith.constant 0 : i32
    %c0_i32_0 = arith.constant 0 : i32
    return %arg1, %arg0, %c0_i32 : i32, i32, i32
  }
  func.func @transform_3(%arg0: i32, %arg1: i32) -> (i32, i32) {
    %c0_i32 = arith.constant 0 : i32
    %c0_i32_0 = arith.constant 0 : i32
    %c0_i32_1 = arith.constant 0 : i32
    return %c0_i32, %c0_i32_0 : i32, i32
  }
  func.func @transform_4(%arg0: i32, %arg1: i32) -> (i32, i32, i32) {
    %c0_i32 = arith.constant 0 : i32
    %c0_i32_0 = arith.constant 0 : i32
    %c0_i32_1 = arith.constant 0 : i32
    return %arg0, %c0_i32, %c0_i32_0 : i32, i32, i32
  }
  func.func @transform_5(%arg0: i32, %arg1: i32) -> (i32, i32, i32) {
    %c0_i32 = arith.constant 0 : i32
    %c0_i32_0 = arith.constant 0 : i32
    %c0_i32_1 = arith.constant 0 : i32
    return %arg0, %c0_i32, %c0_i32_0 : i32, i32, i32
  }
}

</mosaic_0001>

<bundles_post_ra>
// kernel: div.0
= control target key start
LH: loop header
LB: loop body
LE: loop exit
PB: predicated region body
PF: predicated region fallthrough
CT: control target
= control target key end

     0   :  { %s50_s0 = inlined_call_operand.vmem [shape: f32[64,1], index: 0, kind: input, shape index: {}]   ;;  %s51_s1 = inlined_call_operand.vmem [shape: f32[64,1], index: 1, kind: input, shape index: {}]   ;;  %s52_s2 = inlined_call_operand.vmem [shape: f32[64,1], index: 2, kind: output, shape index: {}]  }
   0x1   :  { %v4_v0 = vld [vmem:[%s51_s1] sm:$0x1] }
   0x2   :  { %24 = vrcp.f32 %v4_v0  ;;  %v18_v3 = vand.u32 2147483648, %v4_v0  ;;  %vm12_vm0 = vweird.f32 %v4_v0  ;;  %v16_v5 = vand.u32 2147483647, %v4_v0  ;;  %v3_v9 = vld [vmem:[%s50_s0] sm:$0x1] }
   0x4   :  { %v19_v7 = vor.u32 1.1754944e-38, %v18_v3  ;;  %vm17_vm3 = vcmp.eq.f32.partialorder %v16_v5, 8.507059e+37 }
   0x8   :  { %v25_v1 = vpop.eup %24 }
   0x9   :  { %v8_v2 = vmul.f32 %v25_v1, %v4_v0  ;;  %vm13_vm1 = vweird.f32 %v25_v1 }
   0xa   :  { %vm14_vm2 = vmor %vm12_vm0, %vm13_vm1 }
   0xb   :  { %v9_v4 = vsub.f32 1.0, %v8_v2 }
   0xd   :  { %v10_v6 = vmul.f32 %v25_v1, %v9_v4 }
   0xf   :  { %v11_v8 = vadd.f32 %v25_v1, %v10_v6 }
  0x11   :  { %v15_v10 = vsel %vm14_vm2, %v25_v1, %v11_v8 }
  0x12   :  { %v20_v11 = vsel %vm17_vm3, %v19_v7, %v15_v10 }
  0x13   :  { %v21_v12 = vmul.f32 %v20_v11, %v3_v9 }
  0x15   :  { %23 = vst [vmem:[%s52_s2] sm:$0x1] %v21_v12 }

// kernel: _forward.2
= control target key start
LH: loop header
LB: loop body
LE: loop exit
PB: predicated region body
PF: predicated region fallthrough
CT: control target
= control target key end

     0   :  { %s746_s0 = inlined_call_operand.<no memory space> [shape: f32[1], index: 0, kind: input, shape index: {}]   ;;  %s747_s1 = inlined_call_operand.vmem [shape: bf16[2,2,128], index: 1, kind: input, shape index: {}]   ;;  %s748_s2 = inlined_call_operand.vmem [shape: bf16[4,2,128], index: 2, kind: input, shape index: {}]   ;;  %s749_s3 = inlined_call_operand.vmem [shape: f32[1,128], index: 3, kind: input, shape index: {}]   ;;  %s750_s4 = inlined_call_operand.hbm [shape: f32[1,1,1], index: 4, kind: output, shape index: {0}]   ;;  %s751_s5 = inlined_call_operand.vmem [shape: f32[1,1,128], index: 5, kind: output, shape index: {1}]  }
   0x1   :  { %11 = sst [smem:[#allocation5]] %s746_s0 }
   0x2   :  { %12 = vsyncpa [#allocation7], 0  ;;  %s672_s20 = smov 0   ;;  %s674_s21 = smov 0  }
   0x3   :  { %s676_s22 = smov 0  }
   0x4 LB: > { %s517_s0 = sadd.s32 4294967295, %s635_s22   ;;  %s27_s23 = sadd.s32 1, %s631_s21  ;;  %s635_s22 = sphi %s676_s22, %s18_s22   ;;  %s631_s21 = sphi %s674_s21, %s753_s21   ;;  %s627_s20 = sphi %s672_s20, %s752_s20  }
   0x5   : > { %p28_p0 = scmp.ge.s32.totalorder %s27_s23, 4  ;;  %p521_p1 = scmp.ge.s32.totalorder %s635_s22, 1 }
   0x6   : > { %p215_p2 = scmp.lt.s32.totalorder %s635_s22, 5 }
   0x7   : > { %s755_s23 = smov (%p28_p0, %s27_s23), 0 }
   0x8   : > { %p216_p3 = pnand %p521_p1, %p215_p2 }
   0x9   : > { %p248_p4 = scmp.lt.s32.totalorder (!%p216_p3), %s627_s20, 3  ;;  %p522_p5 = scmp.ne.s32.totalorder (!%p216_p3), %s627_s20, 0 }
   0xa   : > { %219 = sbr.rel (%p216_p3) target bundleno = 1194 (0x4aa), region = 36 }
   0xf   : > { %s695_s24 = scalar_select %p248_p4, %s627_s20, 3 }
  0x10   : > { %260 = sbr.rel (%p522_p5) target bundleno = 301 (0x12d), region = 40  ;;  %s263_s28 = sld [smem:[#allocation5]] (!%p522_p5) }
  0x11   : > { %s253_s27 = scalar_lea.vmem %s748_s2, %s695_s24 }
  0x15   : > { %v265_v0 = vld [vmem:[%s747_s1] sm:$0x1]  ;;  %v523_v3 = vld [vmem:[%s747_s1 + $0x1] sm:$0x1]  ;;  %vm267_vm0 = vcmask 1041408   ;;  %vm261_vm1 = vcmask 0  }
  0x16   : > { %v266_v1 = vunpack.c.l.bf16 %v265_v0  ;;  %v568_v2 = vld [vmem:[%s749_s3] ss:$0 sm:$0xff]  ;;  %v308_v4 = vunpack.c.l.bf16 %v523_v3  ;;  %v279_v11 = vstv %s263_s28  ;;  %v637_v37 = vmov 0.0  }
  0x17   : > { %262 = vst.msk [vmem:[#allocation3] sm:$0x1] %vm261_vm1, %v637_v37 }
  0x18   : > { %v268_v5 = vsel %vm267_vm0, %v266_v1, 0.0  ;;  %v278_v6 = vsub.f32 %v266_v1, %v568_v2  ;;  %v309_v8 = vsel %vm267_vm0, %v308_v4, 0.0  ;;  %v317_v14 = vsub.f32 %v308_v4, %v568_v2 }
  0x19   : > { %v269_v7 = vrot.slane %v268_v5, 4  ;;  %v310_v9 = vrot.slane %v309_v8, 4 }
  0x1a   : > { %v280_v12 = vmul.f32 %v279_v11, %v278_v6  ;;  %v318_v20 = vmul.f32 %v317_v14, %v279_v11 }
  0x1b   : > { %v270_v10 = vadd.f32 %v269_v7, %v268_v5  ;;  %v311_v13 = vadd.f32 %v310_v9, %v309_v8 }
  0x1c   : > { %v281_v16 = vsel %vm267_vm0, %v280_v12, -inf  ;;  %v319_v25 = vsel %vm267_vm0, %v318_v20, -inf }
  0x1d   : > { %v271_v15 = vrot.slane %v270_v10, 2  ;;  %v312_v17 = vrot.slane %v311_v13, 2  ;;  %282 = vmax.xlane.f32.xlu0 %v281_v16 }
  0x1f   : > { %v272_v18 = vadd.f32 %v271_v15, %v270_v10  ;;  %v313_v19 = vadd.f32 %v312_v17, %v311_v13 }
  0x21   : > { %v273_v21 = vrot.slane %v272_v18, 1  ;;  %v314_v22 = vrot.slane %v313_v19, 1 }
  0x23   : > { %v274_v23 = vadd.f32 %v273_v21, %v272_v18  ;;  %v315_v24 = vadd.f32 %v314_v22, %v313_v19 }
  0x25   : > { %v316_v26 = vadd.f32 %v315_v24, %v274_v23  ;;  %320 = vmax.xlane.f32.xlu0 %v319_v25 }
  0x27   : > { %345 = vst [vmem:[#allocation4] sm:$0x1] %v316_v26 }
  0x90   : > { %v283_v27 = vpop.xlane.xlu0 %282 }
  0x91   : > { %v284_v28 = vsub.f32 %v280_v12, %v283_v27 }
  0x93   : > { %v285_v29 = vmul.f32 1.442695, %v284_v28 }
  0x95   : > { %569 = vpow2.f32 %v285_v29 }
  0x98   : > { %v321_v30 = vpop.xlane.xlu0 %320 }
  0x99   : > { %v322_v31 = vsub.f32 %v318_v20, %v321_v30 }
  0x9b   : > { %v570_v32 = vpop.eup %569  ;;  %v323_v33 = vmul.f32 1.442695, %v322_v31 }
  0x9c   : > { %v287_v34 = vsel %vm267_vm0, %v570_v32, 0.0 }
  0x9d   : > { %571 = vpow2.f32 %v323_v33  ;;  %288 = vadd.xlane.f32.xlu1 %v287_v34 }
  0xa3   : > { %v572_v35 = vpop.eup %571 }
  0xa4   : > { %v325_v36 = vsel %vm267_vm0, %v572_v35, 0.0 }
  0xa5   : > { %326 = vadd.xlane.f32.xlu1 %v325_v36 }
 0x110   : > { %v289_v38 = vpop.xlane.xlu1 %288 }
 0x111   : > { %573 = vrcp.f32 %v289_v38  ;;  %v301_v43 = vand.u32 2147483648, %v289_v38  ;;  %v299_v45 = vand.u32 2147483647, %v289_v38  ;;  %vm295_vm3 = vweird.f32 %v289_v38 }
 0x113   : > { %v302_v48 = vor.u32 1.1754944e-38, %v301_v43  ;;  %vm300_vm5 = vcmp.eq.f32.partialorder %v299_v45, 8.507059e+37 }
 0x117   : > { %v574_v39 = vpop.eup %573 }
 0x118   : > { %v291_v40 = vmul.f32 %v574_v39, %v289_v38  ;;  %v327_v41 = vpop.xlane.xlu1 %326  ;;  %vm296_vm2 = vweird.f32 %v574_v39 }
 0x119   : > { %575 = vrcp.f32 %v327_v41  ;;  %vm297_vm4 = vmor %vm295_vm3, %vm296_vm2  ;;  %v339_v54 = vand.u32 2147483648, %v327_v41  ;;  %v337_v56 = vand.u32 2147483647, %v327_v41  ;;  %vm333_vm7 = vweird.f32 %v327_v41 }
 0x11a   : > { %v292_v42 = vsub.f32 1.0, %v291_v40 }
 0x11b   : > { %v340_v58 = vor.u32 1.1754944e-38, %v339_v54  ;;  %vm338_vm9 = vcmp.eq.f32.partialorder %v337_v56, 8.507059e+37 }
 0x11c   : > { %v293_v44 = vmul.f32 %v574_v39, %v292_v42 }
 0x11e   : > { %v294_v46 = vadd.f32 %v574_v39, %v293_v44 }
 0x11f   : > { %v576_v47 = vpop.eup %575 }
 0x120   : > { %v298_v49 = vsel %vm297_vm4, %v574_v39, %v294_v46  ;;  %v329_v50 = vmul.f32 %v576_v47, %v327_v41  ;;  %vm334_vm6 = vweird.f32 %v576_v47 }
 0x121   : > { %v303_v51 = vsel %vm300_vm5, %v302_v48, %v298_v49  ;;  %vm335_vm8 = vmor %vm333_vm7, %vm334_vm6 }
 0x122   : > { %v304_v52 = vmul.f32 %v570_v32, %v303_v51  ;;  %v330_v53 = vsub.f32 1.0, %v329_v50 }
 0x124   : > { %305 = vst [vmem:[#allocation2] sm:$0x3] %v304_v52  ;;  %v331_v55 = vmul.f32 %v576_v47, %v330_v53 }
 0x126   : > { %v332_v57 = vadd.f32 %v576_v47, %v331_v55 }
 0x128   : > { %v336_v59 = vsel %vm335_vm8, %v576_v47, %v332_v57 }
 0x129   : > { %v341_v60 = vsel %vm338_vm9, %v340_v58, %v336_v59 }
 0x12a   : > { %v342_v61 = vmul.f32 %v572_v35, %v341_v60 }
 0x12c   : > { %344 = vst [vmem:[#allocation2 + $0x2] sm:$0x3] %v342_v61 }
 0x12d PF: > { %v346_v62 = vld [vmem:[%s253_s27] sm:$0x1]  ;;  %vm349_vm10 = vcmask 1041408   ;;  %p524_p6 = scmp.eq.s32.totalorder %s627_s20, 0 }
 0x12e   : > { %v347_v63 = vunpack.c.l.bf16 %v346_v62 }
 0x130   : > { %v348_v0 = vmul.f32 10.0, %v347_v63 }
 0x132   : > { %v350_v1 = vsel %vm349_vm10, %v348_v0, -inf }
 0x133   : > { %351 = vmax.xlane.f32.xlu0 %v350_v1 }
 0x1a6   : > { %v352_v2 = vpop.xlane.xlu0 %351 }
 0x1a7   : > { %v353_v3 = vsub.f32 %v348_v0, %v352_v2 }
 0x1a9   : > { %v354_v4 = vmul.f32 1.442695, %v353_v3 }
 0x1ab   : > { %577 = vpow2.f32 %v354_v4 }
 0x1b1   : > { %v578_v5 = vpop.eup %577 }
 0x1b2   : > { %v356_v6 = vsel %vm349_vm10, %v578_v5, 0.0 }
 0x1b3   : > { %357 = vadd.xlane.f32.xlu0 %v356_v6 }
 0x226   : > { %v358_v7 = vpop.xlane.xlu0 %357 }
 0x227   : > { %579 = vlog2.f32 %v358_v7 }
 0x22c   : > { %365 = sbr.rel (%p524_p6) target bundleno = 866 (0x362), region = 44 }
 0x22d   : > { %v580_v8 = vpop.eup %579 }
 0x22e   : > { %v360_v9 = vmul.f32 0.6931472, %v580_v8 }
 0x230   : > { %v361_v10 = vadd.f32 %v360_v9, %v352_v2 }
 0x231   : > { %v366_v11 = vld [vmem:[#allocation2] sm:$0x3]  ;;  %vm373_vm11 = vcmask 1024   ;;  %v371_v24 = vld [vmem:[#allocation3] sm:$0x1]  ;;  %vm386_vm12 = vcmask 0  }
 0x232   : > { %v367_v12 = vmul.f32 %v366_v11, %v348_v0 }
 0x234   : > { %v368_v13 = vsel %vm349_vm10, %v367_v12, 0.0 }
 0x235   : > { %369 = vadd.xlane.f32.xlu0 %v368_v13 }
 0x2a8   : > { %v370_v14 = vpop.xlane.xlu0 %369 }
 0x2a9   : > { %v372_v15 = vsub.f32 %v361_v10, %v370_v14 }
 0x2ab   : > { %v374_v16 = vsel %vm373_vm11, %v372_v15, 0.0 }
 0x2ac   : > { %375 = vadd.xlane.f32.xlu0 %v374_v16 }
 0x31f   : > { %v376_v17 = vpop.xlane.xlu0 %375 }
 0x320   : > { %v377_v18 = vrot.slane %v376_v17, 4 }
 0x322   : > { %v378_v19 = vadd.f32 %v377_v18, %v376_v17 }
 0x324   : > { %v379_v20 = vrot.slane %v378_v19, 2 }
 0x326   : > { %v380_v21 = vadd.f32 %v379_v20, %v378_v19 }
 0x328   : > { %v381_v22 = vrot.slane %v380_v21, 1 }
 0x32a   : > { %v382_v23 = vadd.f32 %v381_v22, %v380_v21 }
 0x32c   : > { %532 = vpush %v382_v23 }
 0x35d   : > { %s533_s12 = spop %532 }
 0x35e   : > { %v384_v25 = vstv %s533_s12 }
 0x35f   : > { %v385_v26 = vadd.f32 %v384_v25, %v371_v24 }
 0x361   : > { %387 = vst.msk [vmem:[#allocation3] sm:$0x1] %vm386_vm12, %v385_v26 }
 0x362 PF: > { %p525_p7 = scmp.eq.s32.totalorder %s627_s20, 1 }
 0x364   : > { %391 = sbr.rel (%p525_p7) target bundleno = 1178 (0x49a), region = 48 }
 0x369   : > { %v393_v27 = vld [vmem:[#allocation2 + $0x2] sm:$0x3]  ;;  %vm400_vm13 = vcmask 1024   ;;  %v398_v40 = vld [vmem:[#allocation3] sm:$0x1]  ;;  %vm413_vm14 = vcmask 0  }
 0x36a   : > { %v394_v28 = vmul.f32 %v393_v27, %v348_v0 }
 0x36c   : > { %v395_v29 = vsel %vm349_vm10, %v394_v28, 0.0 }
 0x36d   : > { %396 = vadd.xlane.f32.xlu0 %v395_v29 }
 0x3e0   : > { %v397_v30 = vpop.xlane.xlu0 %396 }
 0x3e1   : > { %v399_v31 = vsub.f32 %v361_v10, %v397_v30 }
 0x3e3   : > { %v401_v32 = vsel %vm400_vm13, %v399_v31, 0.0 }
 0x3e4   : > { %402 = vadd.xlane.f32.xlu0 %v401_v32 }
 0x457   : > { %v403_v33 = vpop.xlane.xlu0 %402 }
 0x458   : > { %v404_v34 = vrot.slane %v403_v33, 4 }
 0x45a   : > { %v405_v35 = vadd.f32 %v404_v34, %v403_v33 }
 0x45c   : > { %v406_v36 = vrot.slane %v405_v35, 2 }
 0x45e   : > { %v407_v37 = vadd.f32 %v406_v36, %v405_v35 }
 0x460   : > { %v408_v38 = vrot.slane %v407_v37, 1 }
 0x462   : > { %v409_v39 = vadd.f32 %v408_v38, %v407_v37 }
 0x464   : > { %534 = vpush %v409_v39 }
 0x495   : > { %s535_s13 = spop %534 }
 0x496   : > { %v411_v41 = vstv %s535_s13 }
 0x497   : > { %v412_v42 = vadd.f32 %v411_v41, %v398_v40 }
 0x499   : > { %414 = vst.msk [vmem:[#allocation3] sm:$0x1] %vm413_vm14, %v412_v42 }
 0x49a PF: > { %p526_p8 = scmp.ne.s32.totalorder %s627_s20, 3 }
 0x49c   : > { %418 = sbr.rel (%p526_p8) target bundleno = 1188 (0x4a4), region = 52 }
 0x4a1   : > { %v419_v43 = vld [vmem:[#allocation3] sm:$0x1]  ;;  %vm420_vm15 = vcmask 0   ;;  %v422_v44 = vld [vmem:[#allocation4] sm:$0x1] }
 0x4a2   : > { %421 = vst.msk [vmem:[#allocation6] sm:$0x1] %vm420_vm15, %v419_v43 }
 0x4a3   : > { %423 = vst [vmem:[%s751_s5] sm:$0x1] %v422_v44 }
 0x4a4 PF: > { %p540_p9 = scmp.eq.s32.totalorder %s517_s0, 3  ;;  %s436_s18 = sshll.u32 %s750_s4, 4  ;;  %s437_s18 = int_to_ptr.hbm [resolvable:$true] %s436_s18 }
 0x4a5   : > { %s638_s19 = smov [#allocation6]  }
 0x4a6   : > { %s434_s24 = sshll.u32 %s638_s19, 4  ;;  %s435_s24 = int_to_ptr.vmem [resolvable:$true] %s434_s24 }
 0x4a7   : > { %537 = dma.vmem_to_hbm [thread:$0]  (%p540_p9), %s435_s24, 16, %s437_s18, [#allocation7]  }
 0x4a8   : > { %622 = dma.done.wait (%p540_p9), [#allocation7], 16  }
 0x4a9   : > { %624 = vsyncadd (%p540_p9), [#allocation7], 4294967280 }
 0x4aa PF: > { %s18_s22 = sadd.s32 1, %s635_s22   ;;  %s752_s20 = smov %s631_s21 }
 0x4ab   : > { %p15_p10 = scmp.ge.s32.totalorder %s18_s22, 6   ;;  %s753_s21 = smov %s755_s23 }
 0x4ad   :  { %17 = sbr.rel (!%p15_p10) target bundleno = 4 (0x4), region = 98 }
 0x4b2   :  { %459 = vsyncpa [#allocation7], 1 }
 0x4b3   :  { %461 = vsyncpa [#allocation7 + $0x1], 1 }

// kernel: _forward.3
= control target key start
LH: loop header
LB: loop body
LE: loop exit
PB: predicated region body
PF: predicated region fallthrough
CT: control target
= control target key end

     0   :  { %s775_s23 = smov 0   ;;  %s777_s24 = smov 0   ;;  %s865_s0 = inlined_call_operand.<no memory space> [shape: f32[1], index: 0, kind: input, shape index: {}]   ;;  %s866_s1 = inlined_call_operand.vmem [shape: bf16[64,128], index: 1, kind: input, shape index: {}]   ;;  %s867_s2 = inlined_call_operand.vmem [shape: bf16[64,128], index: 2, kind: input, shape index: {}]   ;;  %s868_s3 = inlined_call_operand.vmem [shape: f32[64,1], index: 3, kind: input, shape index: {}]   ;;  %s869_s4 = inlined_call_operand.vmem [shape: f32[1,128], index: 4, kind: input, shape index: {}]   ;;  %s870_s5 = inlined_call_operand.vmem [shape: f32[2,1,1], index: 5, kind: output, shape index: {0}]   ;;  %s871_s6 = inlined_call_operand.vmem [shape: f32[2,1,128], index: 6, kind: output, shape index: {1}]  }
   0x1   :  { %12 = sst [smem:[#allocation4]] %s865_s0  ;;  %s779_s25 = smov 0  }
   0x2   :  { %s781_s26 = smov 0   ;;  %s783_s27 = smov 0  }
   0x3 LB: > { %s27_s0 = sadd.s32 1, %s726_s25  ;;  %s30_s28 = sadd.s32 1, %s730_s26  ;;  %s734_s27 = sphi %s783_s27, %s18_s27   ;;  %s730_s26 = sphi %s781_s26, %s875_s26   ;;  %s726_s25 = sphi %s779_s25, %s874_s25   ;;  %s722_s24 = sphi %s777_s24, %s873_s24   ;;  %s718_s23 = sphi %s775_s23, %s872_s23  }
   0x4   : > { %p28_p0 = scmp.ge.s32.totalorder %s27_s0, 2  ;;  %p614_p1 = scmp.ge.s32.totalorder %s734_s27, 1 }
   0x5   : > { %p275_p2 = scmp.lt.s32.totalorder %s734_s27, 5 }
   0x6   : > { %s877_s0 = smov (%p28_p0, %s27_s0), 0  ;;  %s879_s28 = smov (!%p28_p0, %s30_s28), %s730_s26 }
   0x7   : > { %p276_p3 = pnand %p614_p1, %p275_p2  ;;  %p32_p4 = scmp.ge.s32.totalorder %s879_s28, 2 }
   0x8   : > { %s615_s29 = sshll.u32 (!%p276_p3), %s722_s24, 1  ;;  %p352_p5 = scmp.lt.s32.totalorder (!%p276_p3), %s722_s24, 1 }
   0x9   : > { %s881_s28 = smov (%p32_p4, %s879_s28), 0  ;;  %279 = sbr.rel (%p276_p3) target bundleno = 502 (0x1f6), region = 40 }
   0xa   : > { %s323_s30 = sadd.s32 (!%p276_p3), %s718_s23, %s615_s29  ;;  %p624_p7 = scmp.ne.s32.totalorder (!%p276_p3), %s718_s23, 0 }
   0xb   : > { %s616_s7 = sshll.u32 (!%p276_p3), %s323_s30, 1 }
   0xc   : > { %p325_p6 = scmp.lt.s32.totalorder (!%p276_p3), %s616_s7, 7 }
   0xe   : > { %s883_s24 = smov (!%p352_p5, %s722_s24), 1  ;;  %s885_s7 = smov (!%p325_p6, %s616_s7), 7 }
   0xf   : > { %s354_s10 = scalar_lea.vmem %s870_s5, %s883_s24  ;;  %s357_s13 = scalar_lea.vmem %s871_s6, %s883_s24 }
  0x10   : > { %s617_s14 = sshll.u32 %s885_s7, 2  ;;  %s623_s15 = sshll.u32 %s885_s7, 3 }
  0x11   : > { %s328_s18 = scalar_lea.vmem %s866_s1, %s617_s14  ;;  %s338_s21 = scalar_lea.vmem %s867_s2, %s617_s14 }
  0x12   : > { %s827_s30 = scalar_lea.vmem %s868_s3, %s623_s15  ;;  %361 = sbr.rel (%p624_p7) target bundleno = 26 (0x1a), region = 44 }
  0x17   : > { %vm362_vm0 = vcmask 0   ;;  %v736_v0 = vmov 0.0  }
  0x18   : > { %363 = vst.msk [vmem:[#allocation2] sm:$0x1] %vm362_vm0, %v736_v0 }
  0x19   : > { %364 = vst [vmem:[#allocation3] sm:$0x1] %v736_v0 }
  0x1a PF: > { %v633_v1 = vld [vmem:[%s338_s21] sm:$0xff]   ;;  %s385_s7 = sld [smem:[#allocation4]]  ;;  %vm472_vm9 = vcmask 7168   ;;  %vm487_vm10 = vcmask 0   ;;  %p625_p8 = scmp.ne.s32.totalorder %s718_s23, 1 }
  0x1b   : > { %v629_v2 = vld [vmem:[%s328_s18] sm:$0xff]   ;;  %v634_v3 = vunpack.c.l.bf16 %v633_v1  ;;  %v635_v10 = vunpack.c.h.bf16 %v633_v1 }
  0x1c   : > { %v630_v4 = vunpack.c.l.bf16 %v629_v2  ;;  %v679_v5 = vld [vmem:[%s869_s4] ss:$0 sm:$0xff]  ;;  %v631_v6 = vunpack.c.h.bf16 %v629_v2 }
  0x1d   : > { %v409_v7 = vmul.f32 10.0, %v634_v3  ;;  %v410_v15 = vmul.f32 10.0, %v635_v10 }
  0x1e   : > { %v390_v8 = vsub.f32 %v630_v4, %v679_v5  ;;  %v376_v9 = vadd.f32 %v631_v6, %v630_v4  ;;  %v391_v16 = vsub.f32 %v631_v6, %v679_v5 }
  0x1f   : > { %411 = vmax.xlane.f32.xlu1 %v409_v7 }
  0x20   : > { %v392_v11 = vstv %s385_s7  ;;  %v377_v12 = vrot.slane %v376_v9, 4  ;;  %v375_v21 = vld [vmem:[#allocation3] sm:$0x1] }
  0x21   : > { %v393_v13 = vmul.f32 %v392_v11, %v390_v8  ;;  %v394_v19 = vmul.f32 %v392_v11, %v391_v16  ;;  %v373_v11 = vld [vmem:[%s827_s30] sm:$0xff] }
  0x22   : > { %v378_v14 = vadd.f32 %v377_v12, %v376_v9 }
  0x23   : > { %395 = vmax.xlane.f32.xlu0 %v393_v13 }
  0x24   : > { %v379_v17 = vrot.slane %v378_v14, 2 }
  0x26   : > { %v380_v18 = vadd.f32 %v379_v17, %v378_v14  ;;  %v374_v14 = vld [vmem:[%s827_s30 + $0x8] sm:$0xff] }
  0x27   : > { %413 = vmax.xlane.f32.xlu1 %v410_v15 }
  0x28   : > { %v381_v20 = vrot.slane %v380_v18, 1 }
  0x2a   : > { %v382_v22 = vadd.f32 %v381_v20, %v380_v18 }
  0x2b   : > { %397 = vmax.xlane.f32.xlu0 %v394_v19 }
  0x2c   : > { %v383_v23 = vadd.f32 %v382_v22, %v375_v21 }
  0x2e   : > { %384 = vst [vmem:[#allocation3] sm:$0x1] %v383_v23 }
  0x92   : > { %v412_v24 = vpop.xlane.xlu1 %411 }
  0x93   : > { %v415_v25 = vsub.f32 %v409_v7, %v412_v24 }
  0x95   : > { %v417_v26 = vmul.f32 1.442695, %v415_v25 }
  0x96   : > { %v396_v27 = vpop.xlane.xlu0 %395 }
  0x97   : > { %680 = vpow2.f32 %v417_v26  ;;  %v399_v28 = vsub.f32 %v393_v13, %v396_v27 }
  0x99   : > { %v401_v29 = vmul.f32 1.442695, %v399_v28  ;;  %v469_v28 = vld [vmem:[#allocation2] sm:$0x1] }
  0x9a   : > { %v833_v30 = vpop.xlane.xlu1 %413 }
  0x9b   : > { %682 = vpow2.f32 %v401_v29  ;;  %v416_v31 = vsub.f32 %v410_v15, %v833_v30 }
  0x9d   : > { %v681_v32 = vpop.eup %680  ;;  %v419_v33 = vmul.f32 1.442695, %v416_v31 }
  0x9e   : > { %421 = vadd.xlane.f32.xlu0 %v681_v32  ;;  %v398_v34 = vpop.xlane.xlu0 %397 }
  0x9f   : > { %684 = vpow2.f32 %v419_v33  ;;  %v400_v35 = vsub.f32 %v394_v19, %v398_v34 }
  0xa1   : > { %v683_v36 = vpop.eup %682  ;;  %v403_v37 = vmul.f32 1.442695, %v400_v35 }
  0xa2   : > { %405 = vadd.xlane.f32.xlu2 %v683_v36  ;;  %v431_v41 = vmul.f32 %v683_v36, %v409_v7 }
  0xa3   : > { %686 = vpow2.f32 %v403_v37 }
  0xa5   : > { %v685_v38 = vpop.eup %684 }
  0xa6   : > { %423 = vadd.xlane.f32.xlu1 %v685_v38 }
  0xa9   : > { %v687_v39 = vpop.eup %686 }
  0xaa   : > { %407 = vadd.xlane.f32.xlu2 %v687_v39  ;;  %v432_v40 = vmul.f32 %v687_v39, %v410_v15 }
  0xac   : > { %435 = vadd.xlane.f32.xlu0 %v432_v40 }
  0xb2   : > { %433 = vadd.xlane.f32.xlu2 %v431_v41 }
 0x111   : > { %v422_v43 = vpop.xlane.xlu0 %421 }
 0x115   : > { %v406_v42 = vpop.xlane.xlu2 %405 }
 0x116   : > { %688 = vrcp.f32 %v406_v42  ;;  %v448_v49 = vand.u32 2147483648, %v406_v42  ;;  %v446_v51 = vand.u32 2147483647, %v406_v42  ;;  %vm442_vm2 = vweird.f32 %v406_v42 }
 0x117   : > { %690 = vlog2.f32 %v422_v43 }
 0x118   : > { %v449_v55 = vor.u32 1.1754944e-38, %v448_v49  ;;  %vm447_vm4 = vcmp.eq.f32.partialorder %v446_v51, 8.507059e+37 }
 0x119   : > { %v424_v48 = vpop.xlane.xlu1 %423 }
 0x11c   : > { %v689_v44 = vpop.eup %688 }
 0x11d   : > { %v438_v45 = vmul.f32 %v689_v44, %v406_v42  ;;  %v408_v46 = vpop.xlane.xlu2 %407  ;;  %vm443_vm1 = vweird.f32 %v689_v44  ;;  %v691_v52 = vpop.eup %690 }
 0x11e   : > { %692 = vrcp.f32 %v408_v46  ;;  %vm444_vm3 = vmor %vm442_vm2, %vm443_vm1  ;;  %v426_v60 = vmul.f32 0.6931472, %v691_v52  ;;  %v463_v63 = vand.u32 2147483648, %v408_v46  ;;  %v461_v1 = vand.u32 2147483647, %v408_v46 }
 0x11f   : > { %v439_v47 = vsub.f32 1.0, %v438_v45  ;;  %694 = vlog2.f32 %v424_v48  ;;  %vm457_vm6 = vweird.f32 %v408_v46  ;;  %v436_v10 = vpop.xlane.xlu0 %435 }
 0x120   : > { %v429_v3 = vadd.f32 %v426_v60, %v412_v24  ;;  %v464_v6 = vor.u32 1.1754944e-38, %v463_v63  ;;  %vm462_vm8 = vcmp.eq.f32.partialorder %v461_v1, 8.507059e+37 }
 0x121   : > { %v440_v50 = vmul.f32 %v689_v44, %v439_v47 }
 0x123   : > { %v441_v53 = vadd.f32 %v689_v44, %v440_v50 }
 0x124   : > { %v693_v54 = vpop.eup %692 }
 0x125   : > { %v453_v56 = vmul.f32 %v693_v54, %v408_v46  ;;  %v445_v57 = vsel %vm444_vm3, %v689_v44, %v441_v53  ;;  %v434_v59 = vpop.xlane.xlu2 %433  ;;  %v695_v62 = vpop.eup %694  ;;  %vm458_vm5 = vweird.f32 %v693_v54 }
 0x126   : > { %v450_v58 = vsel %vm447_vm4, %v449_v55, %v445_v57  ;;  %v428_v4 = vmul.f32 0.6931472, %v695_v62  ;;  %vm459_vm7 = vmor %vm457_vm6, %vm458_vm5 }
 0x127   : > { %v454_v61 = vsub.f32 1.0, %v453_v56  ;;  %v451_v2 = vmul.f32 %v450_v58, %v434_v59 }
 0x128   : > { %v430_v12 = vadd.f32 %v428_v4, %v833_v30 }
 0x129   : > { %v455_v0 = vmul.f32 %v693_v54, %v454_v61  ;;  %v467_v8 = vsub.f32 %v429_v3, %v451_v2 }
 0x12b   : > { %v456_v5 = vadd.f32 %v693_v54, %v455_v0  ;;  %v470_v16 = vmul.f32 %v467_v8, %v373_v11 }
 0x12d   : > { %v460_v7 = vsel %vm459_vm7, %v693_v54, %v456_v5  ;;  %v473_v18 = vsel %vm472_vm9, %v470_v16, 0.0 }
 0x12e   : > { %v465_v9 = vsel %vm462_vm8, %v464_v6, %v460_v7 }
 0x12f   : > { %v466_v13 = vmul.f32 %v465_v9, %v436_v10 }
 0x131   : > { %v468_v15 = vsub.f32 %v430_v12, %v466_v13 }
 0x133   : > { %v471_v17 = vmul.f32 %v468_v15, %v374_v14 }
 0x135   : > { %v474_v19 = vsel %vm472_vm9, %v471_v17, 0.0 }
 0x136   : > { %v475_v20 = vadd.f32 %v474_v19, %v473_v18 }
 0x138   : > { %476 = vadd.xlane.f32.xlu1 %v475_v20 }
 0x1ab   : > { %v477_v21 = vpop.xlane.xlu1 %476 }
 0x1ac   : > { %v478_v22 = vrot.slane %v477_v21, 4 }
 0x1ae   : > { %v479_v23 = vadd.f32 %v478_v22, %v477_v21 }
 0x1b0   : > { %v480_v24 = vrot.slane %v479_v23, 2 }
 0x1b2   : > { %v481_v25 = vadd.f32 %v480_v24, %v479_v23 }
 0x1b4   : > { %v482_v26 = vrot.slane %v481_v25, 1 }
 0x1b6   : > { %v483_v27 = vadd.f32 %v482_v26, %v481_v25 }
 0x1b8   : > { %636 = vpush %v483_v27 }
 0x1e9   : > { %s637_s11 = spop %636  ;;  %492 = sbr.rel (%p625_p8) target bundleno = 502 (0x1f6), region = 48 }
 0x1ea   : > { %v485_v29 = vstv %s637_s11 }
 0x1eb   : > { %v486_v30 = vadd.f32 %v485_v29, %v469_v28 }
 0x1ed   : > { %488 = vst.msk [vmem:[#allocation2] sm:$0x1] %vm487_vm10, %v486_v30 }
 0x1ee   : > { %v495_v32 = vld [vmem:[#allocation3] sm:$0x1] }
 0x1ef   : > { %496 = vst [vmem:[%s357_s13] sm:$0x1] %v495_v32 }
 0x1f4   : > { %v493_v31 = vld [vmem:[#allocation2] sm:$0x1] }
 0x1f5   : > { %494 = vst.msk [vmem:[%s354_s10] sm:$0x1] %vm487_vm10, %v493_v31 }
 0x1f6 PF: > { %s18_s27 = sadd.s32 1, %s734_s27   ;;  %s872_s23 = smov %s726_s25 }
 0x1f7   : > { %p15_p9 = scmp.ge.s32.totalorder %s18_s27, 6   ;;  %s873_s24 = smov %s730_s26 }
 0x1f8   : > { %s874_s25 = smov %s877_s0  ;;  %s875_s26 = smov %s881_s28 }
 0x1f9   :  { %17 = sbr.rel (!%p15_p9) target bundleno = 3 (0x3), region = 96 }

</bundles_post_ra>
